<compile_context>
chip_gen: v7x
topology: tpu7x:2x2x1
jax: 0.10.0
libtpu: 0.0.40
codegen_flags: <defaults>
</compile_context>

<pallas_src>
import functools

import jax
import jax.numpy as jnp
from jax.experimental import pallas as pl
from jax.experimental.pallas import tpu as pltpu

_LANE = 128


def _round_up(x, m):
    return (x + m - 1) // m * m


def _vmem_budget_bytes():
    """Per-generation VMEM budget (v7x has 64 MiB / TC, v5e/v6e have 128 MiB)."""
    try:
        cap = int(pltpu.get_tpu_info().vmem_capacity_bytes)
    except Exception:  # conservative fallback: assume the smallest (v7x) budget
        cap = 64 * 1024 * 1024
    return max(32 * 1024 * 1024, min(cap * 3 // 4, 100 * 1024 * 1024))


def gnn_padding(n, *, force_two_pass=False):
    """Return (n_pad, tile_n, tile_k, fused) used by gnn_forward for n nodes."""
    budget = _vmem_budget_bytes()
    big_vmem = budget >= 80 * 1024 * 1024          # v5e / v6e class parts

    fused = (not force_two_pass) and n <= 2048      # 2x bf16 A (<=16 MiB) + slack
    if fused:
        n_pad = _round_up(n, _LANE)
        return n_pad, n_pad, n_pad, True

    # Streaming two-pass path: rows padded to tile_n, cols to tile_k (tile_k is a
    # multiple of tile_n dividing n_pad so both kernels share one square A_pad).
    tile_n = 1024 if (big_vmem and n >= 4096) else 512
    tile_n = min(tile_n, _round_up(n, _LANE))
    n_pad = _round_up(n, tile_n)
    tile_k_cap = 4096 if big_vmem else 2048
    tile_k = tile_n
    cand = tile_k_cap
    while cand >= tile_n:
        if cand % tile_n == 0 and n_pad % cand == 0:
            tile_k = cand
            break
        cand -= tile_n
    # NOTE(v7x): with 2 TCs, an odd/small number of row tiles leaves one core
    # idle on the tail; tile_n=512 keeps n_pad//tile_n >= 4 for realistic N.
    return n_pad, tile_n, tile_k, False


# --------------------------------------------------------------------------
# Kernels
# --------------------------------------------------------------------------
def _fused_kernel(a_ref, xw1_ref, b1_ref, w2_ref, b2_ref, wl_ref, bl_ref, o_ref):
    """Single-pass GNN for graphs whose padded bf16 A_hat fits in VMEM.

    A is loaded once and reused for both propagation steps. Padded rows of the
    intermediate equal relu(b1) @ W2, but A's padded columns are zero so they
    never contribute to real outputs.
    """
    a = a_ref[...]
    h1 = jnp.dot(a, xw1_ref[...], preferred_element_type=jnp.float32)
    h1 = jnp.maximum(h1 + b1_ref[...], 0.0)
    # F.dropout(p=0.1, training=False) -> identity (eval mode).
    g = jnp.dot(h1.astype(jnp.bfloat16), w2_ref[...],
                preferred_element_type=jnp.float32)
    h2 = jnp.dot(a, g.astype(jnp.bfloat16), preferred_element_type=jnp.float32)
    h2 = jnp.maximum(h2 + b2_ref[...], 0.0)
    out = jnp.dot(h2.astype(jnp.bfloat16), wl_ref[...],
                  preferred_element_type=jnp.float32)
    o_ref[...] = out + bl_ref[...]                  # lane-dense f32 store


def _conv1_kernel(a_ref, xw1_ref, b1_ref, w2_ref, g_ref, acc_ref, *, tile_k):
    """G_tile = relu(A_row_tile @ XW1 + b1) @ W2, accumulated over K tiles of A.

    XW1 is fully VMEM-resident (constant index_map) so only A streams from HBM;
    the current K slab is selected inside the kernel with pl.ds.
    """
    k = pl.program_id(1)

    @pl.when(k == 0)
    def _():
        acc_ref[...] = jnp.zeros_like(acc_ref)

    ks = pl.multiple_of(k * tile_k, tile_k)
    acc_ref[...] += jnp.dot(a_ref[...], xw1_ref[pl.ds(ks, tile_k), :],
                            preferred_element_type=jnp.float32)

    @pl.when(k == pl.num_programs(1) - 1)
    def _():
        h = jnp.maximum(acc_ref[...] + b1_ref[...], 0.0)
        # dropout(p=0.1, training=False) -> identity (eval mode).
        g_ref[...] = jnp.dot(h.astype(jnp.bfloat16), w2_ref[...],
                             preferred_element_type=jnp.float32
                             ).astype(g_ref.dtype)  # lane-dense bf16 store


def _conv2_head_kernel(a_ref, g_ref, b2_ref, wl_ref, bl_ref, o_ref, acc_ref, *,
                       tile_k):
    """out_tile = relu(A_row_tile @ G + b2) @ Wl + bl, G fully VMEM-resident."""
    k = pl.program_id(1)

    @pl.when(k == 0)
    def _():
        acc_ref[...] = jnp.zeros_like(acc_ref)

    ks = pl.multiple_of(k * tile_k, tile_k)
    acc_ref[...] += jnp.dot(a_ref[...], g_ref[pl.ds(ks, tile_k), :],
                            preferred_element_type=jnp.float32)

    @pl.when(k == pl.num_programs(1) - 1)
    def _():
        h = jnp.maximum(acc_ref[...] + b2_ref[...], 0.0)
        out = jnp.dot(h.astype(jnp.bfloat16), wl_ref[...],
                      preferred_element_type=jnp.float32)
        o_ref[...] = out + bl_ref[...]              # lane-dense f32 store


# --------------------------------------------------------------------------
# Wrapper
# --------------------------------------------------------------------------
def _pad2(arr, rows, cols, dtype):
    arr = jnp.asarray(arr, dtype)
    if arr.ndim == 1:
        arr = arr.reshape(1, -1)
    out = jnp.zeros((rows, cols), dtype)
    return out.at[:arr.shape[0], :arr.shape[1]].set(arr)


def gnn_forward(a_hat, num_nodes, x, w1, b1, w2, b2, wl, bl, *,
                force_two_pass=False):
    """GNN forward.

    a_hat: normalized adjacency, ideally the pre-padded bf16 [n_pad, n_pad]
           array from build_normalized_adjacency (amortized across calls).
           A raw [N, N] f32 matrix is also accepted (padded/cast here).
    """
    n = num_nodes
    hid = w1.shape[1]
    out_c = wl.shape[1]
    hid_p = _round_up(hid, _LANE)
    out_p = _round_up(out_c, _LANE)

    n_pad, tile_n, tile_k, fused = gnn_padding(n, force_two_pass=force_two_pass)
    budget = _vmem_budget_bytes()

    if a_hat.shape == (n_pad, n_pad) and a_hat.dtype == jnp.bfloat16:
        a_pad = a_hat                      # pre-padded: no extra O(N^2) pass
    else:
        a_pad = _pad2(a_hat, n_pad, n_pad, jnp.bfloat16)

    # Tiny X @ W1 (N x in @ in x hid) precomputed outside the kernel in f32.
    xw1 = jnp.asarray(x, jnp.float32) @ jnp.asarray(w1, jnp.float32)
    xw1_p = _pad2(xw1, n_pad, hid_p, jnp.bfloat16)
    b1_p = _pad2(b1, 1, hid_p, jnp.float32)
    w2_p = _pad2(w2, hid_p, hid_p, jnp.bfloat16)
    b2_p = _pad2(b2, 1, hid_p, jnp.float32)
    wl_p = _pad2(wl, hid_p, out_p, jnp.bfloat16)
    bl_p = _pad2(bl, 1, out_p, jnp.float32)

    if fused:
        out_pad = pl.pallas_call(
            _fused_kernel,
            out_shape=jax.ShapeDtypeStruct((n_pad, out_p), jnp.float32),
            grid=(1,),
            in_specs=[
                pl.BlockSpec((n_pad, n_pad), lambda i: (0, 0)),   # A (resident)
                pl.BlockSpec((n_pad, hid_p), lambda i: (0, 0)),   # X @ W1
                pl.BlockSpec((1, hid_p), lambda i: (0, 0)),       # b1
                pl.BlockSpec((hid_p, hid_p), lambda i: (0, 0)),   # W2
                pl.BlockSpec((1, hid_p), lambda i: (0, 0)),       # b2
                pl.BlockSpec((hid_p, out_p), lambda i: (0, 0)),   # Wl
                pl.BlockSpec((1, out_p), lambda i: (0, 0)),       # bl
            ],
            out_specs=pl.BlockSpec((n_pad, out_p), lambda i: (0, 0)),
            compiler_params=pltpu.CompilerParams(
                dimension_semantics=("arbitrary",),
                vmem_limit_bytes=budget),
        )(a_pad, xw1_p, b1_p, w2_p, b2_p, wl_p, bl_p)
        return out_pad[:n, :out_c]

    # ---- Streaming two-pass path (large graphs) --------------------------
    grid = (n_pad // tile_n, n_pad // tile_k)
    cparams = pltpu.CompilerParams(
        dimension_semantics=("parallel", "arbitrary"),
        vmem_limit_bytes=budget)

    # Layer 1 (+ fused W2): G = relu(A @ XW1 + b1) @ W2
    g = pl.pallas_call(
        functools.partial(_conv1_kernel, tile_k=tile_k),
        out_shape=jax.ShapeDtypeStruct((n_pad, hid_p), jnp.bfloat16),
        grid=grid,
        in_specs=[
            pl.BlockSpec((tile_n, tile_k), lambda i, k: (i, k)),   # A tile (streamed)
            pl.BlockSpec((n_pad, hid_p), lambda i, k: (0, 0)),     # XW1 (resident)
            pl.BlockSpec((1, hid_p), lambda i, k: (0, 0)),         # b1
            pl.BlockSpec((hid_p, hid_p), lambda i, k: (0, 0)),     # W2
        ],
        out_specs=pl.BlockSpec((tile_n, hid_p), lambda i, k: (i, 0)),
        scratch_shapes=[pltpu.VMEM((tile_n, hid_p), jnp.float32)],
        compiler_params=cparams,
    )(a_pad, xw1_p, b1_p, w2_p)

    # Layer 2 + linear head: out = relu(A @ G + b2) @ Wl + bl
    out_pad = pl.pallas_call(
        functools.partial(_conv2_head_kernel, tile_k=tile_k),
        out_shape=jax.ShapeDtypeStruct((n_pad, out_p), jnp.float32),
        grid=grid,
        in_specs=[
            pl.BlockSpec((tile_n, tile_k), lambda i, k: (i, k)),   # A tile (streamed)
            pl.BlockSpec((n_pad, hid_p), lambda i, k: (0, 0)),     # G (resident)
            pl.BlockSpec((1, hid_p), lambda i, k: (0, 0)),         # b2
            pl.BlockSpec((hid_p, out_p), lambda i, k: (0, 0)),     # Wl
            pl.BlockSpec((1, out_p), lambda i, k: (0, 0)),         # bl
        ],
        out_specs=pl.BlockSpec((tile_n, out_p), lambda i, k: (i, 0)),
        scratch_shapes=[pltpu.VMEM((tile_n, hid_p), jnp.float32)],
        compiler_params=cparams,
    )(a_pad, g, b2_p, wl_p, bl_p)

    return out_pad[:n, :out_c]


# --------------------------------------------------------------------------
# Graph / parameter construction
# --------------------------------------------------------------------------
def build_normalized_adjacency(edge_index, num_nodes, *, n_pad=None,
                               dtype=jnp.float32):
    """Dense A_hat = D^{-1/2} (A + I) D^{-1/2}; optionally zero-padded + cast.

    Building the padded bf16 operand here (once, amortized across forward
    calls) avoids a separate padded re-materialization of the O(N^2) matrix
    inside gnn_forward.
    """
    src, dst = edge_index[0], edge_index[1]
    a = jnp.zeros((num_nodes, num_nodes), jnp.float32)
    a = a.at[dst, src].set(1.0)                        # message flows src -> dst
    a = a + jnp.eye(num_nodes, dtype=jnp.float32)      # self-loops
    deg = jnp.sum(a, axis=1)
    dinv = jnp.where(deg > 0, 1.0 / jnp.sqrt(deg), 0.0)
    a = dinv[:, None] * a * dinv[None, :]
    if n_pad is not None and n_pad != num_nodes:
        a = jnp.zeros((n_pad, n_pad), jnp.float32).at[:num_nodes, :num_nodes].set(a)
    return a.astype(dtype)


def init_params(key, in_channels, hidden_channels, out_channels):
    k1, k2, k3, k4 = jax.random.split(key, 4)

    def glorot(k, fan_in, fan_out):
        lim = jnp.sqrt(6.0 / (fan_in + fan_out))
        return jax.random.uniform(k, (fan_in, fan_out), jnp.float32, -lim, lim)

    w1 = glorot(k1, in_channels, hidden_channels)
    b1 = jnp.zeros((1, hidden_channels), jnp.float32)
    w2 = glorot(k2, hidden_channels, hidden_channels)
    b2 = jnp.zeros((1, hidden_channels), jnp.float32)
    lim = 1.0 / jnp.sqrt(jnp.float32(hidden_channels))
    wl = jax.random.uniform(k3, (hidden_channels, out_channels), jnp.float32,
                            -lim, lim)
    bl = jax.random.uniform(k4, (1, out_channels), jnp.float32, -lim, lim)
    return w1, b1, w2, b2, wl, bl


if __name__ == "__main__":
    key = jax.random.PRNGKey(0)

    num_nodes = 16
    in_channels, hidden_channels, out_channels = 4, 32, 1

    kx, kp = jax.random.split(key, 2)
    x = jax.random.normal(kx, (num_nodes, in_channels), jnp.float32)

    # Deterministic edge set: ring graph (both directions) + a few chords.
    idx = jnp.arange(num_nodes, dtype=jnp.int32)
    src = jnp.concatenate([idx, (idx + 1) % num_nodes, idx[::4]])
    dst = jnp.concatenate([(idx + 1) % num_nodes, idx,
                           (idx[::4] + 5) % num_nodes])
    edge_index = jnp.stack([src, dst], axis=0)

    w1, b1, w2, b2, wl, bl = init_params(kp, in_channels, hidden_channels,
                                         out_channels)

    # Pure-JAX f32 reference (kernel uses bf16 MXU operands -> relaxed tol).
    a_ref_f32 = build_normalized_adjacency(edge_index, num_nodes)

    def ref(a, x, w1, b1, w2, b2, wl, bl):
        h = jnp.maximum(a @ (x @ w1) + b1, 0.0)
        h = jnp.maximum(a @ (h @ w2) + b2, 0.0)
        return h @ wl + bl

    expected = ref(a_ref_f32, x, w1, b1, w2, b2, wl, bl)

    # --- Fused (VMEM-resident A) path, with pre-padded bf16 A -------------
    n_pad, _, _, _ = gnn_padding(num_nodes)
    a_pad = build_normalized_adjacency(edge_index, num_nodes, n_pad=n_pad,
                                       dtype=jnp.bfloat16)
    out = gnn_forward(a_pad, num_nodes, x, w1, b1, w2, b2, wl, bl)
    jax.block_until_ready(out)
    assert out.shape == (num_nodes, out_channels)
    assert jnp.allclose(out, expected, atol=3e-2, rtol=3e-2), (
        float(jnp.max(jnp.abs(out - expected))))

    # --- Also exercise the streaming two-pass path (used for large N) -----
    n_pad2, _, _, _ = gnn_padding(num_nodes, force_two_pass=True)
    a_pad2 = build_normalized_adjacency(edge_index, num_nodes, n_pad=n_pad2,
                                        dtype=jnp.bfloat16)
    out2 = gnn_forward(a_pad2, num_nodes, x, w1, b1, w2, b2, wl, bl,
                       force_two_pass=True)
    jax.block_until_ready(out2)
    assert out2.shape == (num_nodes, out_channels)
    assert jnp.allclose(out2, expected, atol=3e-2, rtol=3e-2), (
        float(jnp.max(jnp.abs(out2 - expected))))

    print("KERNEL_OK")
</pallas_src>

<mosaic_0001>
module attributes {stable_mosaic.version = 11 : i64} {
  func.func @_fused_kernel(%arg0: i32, %arg1: memref<128x128xbf16, #tpu.memory_space<vmem>>, %arg2: memref<128x128xbf16, #tpu.memory_space<vmem>>, %arg3: memref<1x128xf32, #tpu.memory_space<vmem>>, %arg4: memref<128x128xbf16, #tpu.memory_space<vmem>>, %arg5: memref<1x128xf32, #tpu.memory_space<vmem>>, %arg6: memref<128x128xbf16, #tpu.memory_space<vmem>>, %arg7: memref<1x128xf32, #tpu.memory_space<vmem>>, %arg8: memref<128x128xf32, #tpu.memory_space<vmem>>) attributes {dimension_semantics = [#tpu.dimension_semantics<arbitrary>], iteration_bounds = array<i64: 1>, scalar_prefetch = 0 : i64, scratch_operands = 0 : i64, tpu.core_type = #tpu.core_type<tc>, window_params = [{pipeline_mode = #tpu.pipeline_mode<synchronous>, transform_indices = @transform_0, window_bounds = array<i64: 128, 128>}, {pipeline_mode = #tpu.pipeline_mode<synchronous>, transform_indices = @transform_1, window_bounds = array<i64: 128, 128>}, {pipeline_mode = #tpu.pipeline_mode<synchronous>, transform_indices = @transform_2, window_bounds = array<i64: 1, 128>}, {pipeline_mode = #tpu.pipeline_mode<synchronous>, transform_indices = @transform_3, window_bounds = array<i64: 128, 128>}, {pipeline_mode = #tpu.pipeline_mode<synchronous>, transform_indices = @transform_4, window_bounds = array<i64: 1, 128>}, {pipeline_mode = #tpu.pipeline_mode<synchronous>, transform_indices = @transform_5, window_bounds = array<i64: 128, 128>}, {pipeline_mode = #tpu.pipeline_mode<synchronous>, transform_indices = @transform_6, window_bounds = array<i64: 1, 128>}, {pipeline_mode = #tpu.pipeline_mode<synchronous>, transform_indices = @transform_7, window_bounds = array<i64: 128, 128>}]} {
    %c0 = arith.constant 0 : index
    %c0_0 = arith.constant 0 : index
    %0 = vector.load %arg1[%c0, %c0_0] : memref<128x128xbf16, #tpu.memory_space<vmem>>, vector<128x128xbf16>
    %c0_1 = arith.constant 0 : index
    %c0_2 = arith.constant 0 : index
    %1 = vector.load %arg2[%c0_1, %c0_2] : memref<128x128xbf16, #tpu.memory_space<vmem>>, vector<128x128xbf16>
    %cst = arith.constant dense<0.000000e+00> : vector<128x128xf32>
    %2 = tpu.matmul %0, %1, %cst {dimension_numbers = #tpu.dot_dimension_numbers<[1], [0], [0], [1], [0, 0, 1, 1], [], []>} : vector<128x128xbf16>, vector<128x128xbf16>, vector<128x128xf32> -> vector<128x128xf32>
    %c0_3 = arith.constant 0 : index
    %c0_4 = arith.constant 0 : index
    %3 = vector.load %arg3[%c0_3, %c0_4] : memref<1x128xf32, #tpu.memory_space<vmem>>, vector<1x128xf32>
    %4 = vector.broadcast %3 : vector<1x128xf32> to vector<128x128xf32>
    %5 = arith.addf %2, %4 : vector<128x128xf32>
    %cst_5 = arith.constant 0.000000e+00 : f32
    %6 = vector.broadcast %cst_5 : f32 to vector<128x128xf32>
    %7 = arith.maximumf %5, %6 : vector<128x128xf32>
    %8 = arith.truncf %7 : vector<128x128xf32> to vector<128x128xbf16>
    %c0_6 = arith.constant 0 : index
    %c0_7 = arith.constant 0 : index
    %9 = vector.load %arg4[%c0_6, %c0_7] : memref<128x128xbf16, #tpu.memory_space<vmem>>, vector<128x128xbf16>
    %cst_8 = arith.constant dense<0.000000e+00> : vector<128x128xf32>
    %10 = tpu.matmul %8, %9, %cst_8 {dimension_numbers = #tpu.dot_dimension_numbers<[1], [0], [0], [1], [0, 0, 1, 1], [], []>} : vector<128x128xbf16>, vector<128x128xbf16>, vector<128x128xf32> -> vector<128x128xf32>
    %11 = arith.truncf %10 : vector<128x128xf32> to vector<128x128xbf16>
    %cst_9 = arith.constant dense<0.000000e+00> : vector<128x128xf32>
    %12 = tpu.matmul %0, %11, %cst_9 {dimension_numbers = #tpu.dot_dimension_numbers<[1], [0], [0], [1], [0, 0, 1, 1], [], []>} : vector<128x128xbf16>, vector<128x128xbf16>, vector<128x128xf32> -> vector<128x128xf32>
    %c0_10 = arith.constant 0 : index
    %c0_11 = arith.constant 0 : index
    %13 = vector.load %arg5[%c0_10, %c0_11] : memref<1x128xf32, #tpu.memory_space<vmem>>, vector<1x128xf32>
    %14 = vector.broadcast %13 : vector<1x128xf32> to vector<128x128xf32>
    %15 = arith.addf %12, %14 : vector<128x128xf32>
    %cst_12 = arith.constant 0.000000e+00 : f32
    %16 = vector.broadcast %cst_12 : f32 to vector<128x128xf32>
    %17 = arith.maximumf %15, %16 : vector<128x128xf32>
    %18 = arith.truncf %17 : vector<128x128xf32> to vector<128x128xbf16>
    %c0_13 = arith.constant 0 : index
    %c0_14 = arith.constant 0 : index
    %19 = vector.load %arg6[%c0_13, %c0_14] : memref<128x128xbf16, #tpu.memory_space<vmem>>, vector<128x128xbf16>
    %cst_15 = arith.constant dense<0.000000e+00> : vector<128x128xf32>
    %20 = tpu.matmul %18, %19, %cst_15 {dimension_numbers = #tpu.dot_dimension_numbers<[1], [0], [0], [1], [0, 0, 1, 1], [], []>} : vector<128x128xbf16>, vector<128x128xbf16>, vector<128x128xf32> -> vector<128x128xf32>
    %c0_16 = arith.constant 0 : index
    %c0_17 = arith.constant 0 : index
    %21 = vector.load %arg7[%c0_16, %c0_17] : memref<1x128xf32, #tpu.memory_space<vmem>>, vector<1x128xf32>
    %22 = vector.broadcast %21 : vector<1x128xf32> to vector<128x128xf32>
    %23 = arith.addf %20, %22 : vector<128x128xf32>
    %c0_18 = arith.constant 0 : index
    %c0_19 = arith.constant 0 : index
    %24 = vector.load %arg8[%c0_18, %c0_19] : memref<128x128xf32, #tpu.memory_space<vmem>>, vector<128x128xf32>
    tpu.vector_store %arg8[%c0_18, %c0_19], %23 {strides = array<i32>} : memref<128x128xf32, #tpu.memory_space<vmem>>, vector<128x128xf32>,
    return
  }
  func.func @transform_0(%arg0: i32) -> (i32, i32) {
    %c0_i32 = arith.constant 0 : i32
    %c0_i32_0 = arith.constant 0 : i32
    %c0_i32_1 = arith.constant 0 : i32
    return %c0_i32, %c0_i32_0 : i32, i32
  }
  func.func @transform_1(%arg0: i32) -> (i32, i32) {
    %c0_i32 = arith.constant 0 : i32
    %c0_i32_0 = arith.constant 0 : i32
    %c0_i32_1 = arith.constant 0 : i32
    return %c0_i32, %c0_i32_0 : i32, i32
  }
  func.func @transform_2(%arg0: i32) -> (i32, i32) {
    %c0_i32 = arith.constant 0 : i32
    %c0_i32_0 = arith.constant 0 : i32
    %c0_i32_1 = arith.constant 0 : i32
    return %c0_i32, %c0_i32_0 : i32, i32
  }
  func.func @transform_3(%arg0: i32) -> (i32, i32) {
    %c0_i32 = arith.constant 0 : i32
    %c0_i32_0 = arith.constant 0 : i32
    %c0_i32_1 = arith.constant 0 : i32
    return %c0_i32, %c0_i32_0 : i32, i32
  }
  func.func @transform_4(%arg0: i32) -> (i32, i32) {
    %c0_i32 = arith.constant 0 : i32
    %c0_i32_0 = arith.constant 0 : i32
    %c0_i32_1 = arith.constant 0 : i32
    return %c0_i32, %c0_i32_0 : i32, i32
  }
  func.func @transform_5(%arg0: i32) -> (i32, i32) {
    %c0_i32 = arith.constant 0 : i32
    %c0_i32_0 = arith.constant 0 : i32
    %c0_i32_1 = arith.constant 0 : i32
    return %c0_i32, %c0_i32_0 : i32, i32
  }
  func.func @transform_6(%arg0: i32) -> (i32, i32) {
    %c0_i32 = arith.constant 0 : i32
    %c0_i32_0 = arith.constant 0 : i32
    %c0_i32_1 = arith.constant 0 : i32
    return %c0_i32, %c0_i32_0 : i32, i32
  }
  func.func @transform_7(%arg0: i32) -> (i32, i32) {
    %c0_i32 = arith.constant 0 : i32
    %c0_i32_0 = arith.constant 0 : i32
    %c0_i32_1 = arith.constant 0 : i32
    return %c0_i32, %c0_i32_0 : i32, i32
  }
}

</mosaic_0001>

<bundles_post_ra>
// kernel: tpu_custom_call.1
= control target key start
LH: loop header
LB: loop body
LE: loop exit
PB: predicated region body
PF: predicated region fallthrough
CT: control target
= control target key end

     0   :  { %12 = vsyncpa [#allocation3], 0  ;;  %s1397_s0 = inlined_call_operand.hbm [shape: bf16[128,128], index: 0, kind: input, shape index: {}]   ;;  %s1398_s1 = inlined_call_operand.hbm [shape: bf16[128,128], index: 1, kind: input, shape index: {}]   ;;  %s1399_s2 = inlined_call_operand.vmem [shape: f32[1,128], index: 2, kind: input, shape index: {}]   ;;  %s1400_s3 = inlined_call_operand.hbm [shape: bf16[128,128], index: 3, kind: input, shape index: {}]   ;;  %s1401_s4 = inlined_call_operand.vmem [shape: f32[1,128], index: 4, kind: input, shape index: {}]   ;;  %s1402_s5 = inlined_call_operand.hbm [shape: bf16[128,128], index: 5, kind: input, shape index: {}]   ;;  %s1403_s6 = inlined_call_operand.vmem [shape: f32[1,128], index: 6, kind: input, shape index: {}]   ;;  %s1404_s7 = inlined_call_operand.hbm [shape: f32[128,128], index: 7, kind: output, shape index: {}]  }
   0x1   :  { %13 = vsyncpa [#allocation6], 0 }
   0x2   :  { %14 = vsyncpa [#allocation9], 0 }
   0x3   :  { %15 = vsyncpa [#allocation4], 0  ;;  %s1225_s24 = smov [#allocation5]   ;;  %s1226_s26 = smov [#allocation2]  }
   0x4   :  { %s33_s25 = sshll.u32 %s1225_s24, 4  ;;  %s21_s27 = sshll.u32 %s1226_s26, 4  ;;  %s34_s25 = int_to_ptr.vmem [resolvable:$true] %s33_s25  ;;  %s1274_s27 = int_to_ptr.vmem [resolvable:$true] %s21_s27 }
   0x5   :  { %s1107_s30 = scalar_lea.hbm %s1398_s1, 1024 }
   0x6   :  { %p1108_p0 = scmp.ne.s32.totalorder %s1398_s1, %s1107_s30  ;;  %p1111_p1 = scmp.lt.u32.totalorder %s1107_s30, %s1398_s1 }
   0x8   :  { %p1113_p2 = pnand %p1111_p1, %p1108_p0 }
   0xa   :  { %1116 = shalt.err (!%p1113_p2)
}
   0xb   :  { %s1117_s12 = scalar_lea.vmem %s34_s25, 1024  ;;  %p1122_p4 = scmp.lt.s32.totalorder %s34_s25, %s34_s25 }
   0xc   :  { %p1118_p3 = scmp.ne.s32.totalorder %s34_s25, %s1117_s12  ;;  %p1123_p5 = scmp.lt.s32.totalorder %s1117_s12, %s1117_s12 }
   0xe   :  { %p1124_p6 = por %p1123_p5, %p1122_p4 }
  0x10   :  { %p1125_p7 = pnand %p1124_p6, %p1118_p3 }
  0x12   :  { %1128 = shalt.err (!%p1125_p7)
}
  0x13   :  { %s1227_s13 = smov 64   ;;  %s1228_s14 = smov 4  }
  0x14   :  { %39 = dma.hbm_to_vmem [thread:$0]  %s1398_s1, 1024, %s34_s25, [#allocation6], %s1227_s13, %s1227_s13, %s1228_s14  }
  0x15   :  { %s1129_s19 = scalar_lea.hbm %s1397_s0, 1024 }
  0x16   :  { %p1130_p8 = scmp.ne.s32.totalorder %s1397_s0, %s1129_s19  ;;  %p1133_p9 = scmp.lt.u32.totalorder %s1129_s19, %s1397_s0 }
  0x18   :  { %p1135_p10 = pnand %p1133_p9, %p1130_p8 }
  0x1a   :  { %1138 = shalt.err (!%p1135_p10)
}
  0x1b   :  { %s1139_s24 = scalar_lea.vmem %s1274_s27, 1024  ;;  %p1144_p12 = scmp.lt.s32.totalorder %s1274_s27, %s1274_s27 }
  0x1c   :  { %p1140_p11 = scmp.ne.s32.totalorder %s1274_s27, %s1139_s24  ;;  %p1145_p13 = scmp.lt.s32.totalorder %s1139_s24, %s1139_s24 }
  0x1e   :  { %p1146_p0 = por %p1145_p13, %p1144_p12 }
  0x20   :  { %p1147_p1 = pnand %p1146_p0, %p1140_p11 }
  0x22   :  { %1150 = shalt.err (!%p1147_p1)
}
  0x23   :  { %27 = dma.hbm_to_vmem [thread:$0]  %s1397_s0, 1024, %s1274_s27, [#allocation3], %s1227_s13, %s1227_s13, %s1228_s14  }
  0x24   :  { %s1229_s26 = smov [#allocation7]   ;;  %s1230_s29 = smov [#allocation8]  }
  0x25   :  { %s47_s28 = sshll.u32 %s1229_s26, 4  ;;  %s61_s30 = sshll.u32 %s1230_s29, 4  ;;  %s48_s28 = int_to_ptr.vmem [resolvable:$true] %s47_s28  ;;  %s1311_s30 = int_to_ptr.vmem [resolvable:$true] %s61_s30 }
  0x26   :  { %s1151_s10 = scalar_lea.hbm %s1400_s3, 1024 }
  0x27   :  { %p1152_p2 = scmp.ne.s32.totalorder %s1400_s3, %s1151_s10  ;;  %p1155_p3 = scmp.lt.u32.totalorder %s1151_s10, %s1400_s3 }
  0x29   :  { %p1157_p4 = pnand %p1155_p3, %p1152_p2 }
  0x2b   :  { %1160 = shalt.err (!%p1157_p4)
}
  0x2c   :  { %s1161_s0 = scalar_lea.vmem %s48_s28, 1024  ;;  %p1166_p6 = scmp.lt.s32.totalorder %s48_s28, %s48_s28 }
  0x2d   :  { %p1162_p5 = scmp.ne.s32.totalorder %s48_s28, %s1161_s0  ;;  %p1167_p7 = scmp.lt.s32.totalorder %s1161_s0, %s1161_s0 }
  0x2f   :  { %p1168_p8 = por %p1167_p7, %p1166_p6 }
  0x31   :  { %p1169_p9 = pnand %p1168_p8, %p1162_p5 }
  0x33   :  { %1172 = shalt.err (!%p1169_p9)
}
  0x34   :  { %53 = dma.hbm_to_vmem [thread:$0]  %s1400_s3, 1024, %s48_s28, [#allocation6], %s1227_s13, %s1227_s13, %s1228_s14  }
  0x35   :  { %s1173_s20 = scalar_lea.hbm %s1402_s5, 1024 }
  0x36   :  { %p1174_p10 = scmp.ne.s32.totalorder %s1402_s5, %s1173_s20  ;;  %p1177_p11 = scmp.lt.u32.totalorder %s1173_s20, %s1402_s5 }
  0x38   :  { %p1179_p12 = pnand %p1177_p11, %p1174_p10 }
  0x3a   :  { %1182 = shalt.err (!%p1179_p12)
}
  0x3b   :  { %s1183_s1 = scalar_lea.vmem %s1311_s30, 1024  ;;  %p1188_p0 = scmp.lt.s32.totalorder %s1311_s30, %s1311_s30 }
  0x3c   :  { %p1184_p13 = scmp.ne.s32.totalorder %s1311_s30, %s1183_s1  ;;  %p1189_p1 = scmp.lt.s32.totalorder %s1183_s1, %s1183_s1 }
  0x3e   :  { %p1190_p2 = por %p1189_p1, %p1188_p0 }
  0x40   :  { %p1191_p3 = pnand %p1190_p2, %p1184_p13 }
  0x42   :  { %1194 = shalt.err (!%p1191_p3)
}
  0x43   :  { %67 = dma.hbm_to_vmem [thread:$0]  %s1402_s5, 1024, %s1311_s30, [#allocation9], %s1227_s13, %s1227_s13, %s1228_s14  }
  0x44   :  { %1217 = dma.done.wait [#allocation3], 1024  }
  0x45   :  { %1218 = vsyncadd [#allocation3], 4294966272 }
  0x46   :  { %1219 = dma.done.wait [#allocation6], 2048  }
  0x47   :  { %1220 = vsyncadd [#allocation6], 4294965248 }
  0x48   :  { %1221 = dma.done.wait [#allocation9], 1024  }
  0x49   :  { %1222 = vsyncadd [#allocation9], 4294966272  ;;  %v1075_v0 = vld [vmem:[#allocation5] sm:$0xff]   ;;  %v1076_v1 = vld [vmem:[#allocation5 + $0x8] sm:$0xff]  }
  0x4a   :  { %938 = vmatprep.subr.bf16.mxu0 %v1075_v0  ;;  %v1077_v2 = vld [vmem:[#allocation5 + $0x10] sm:$0xff]   ;;  %v1078_v3 = vld [vmem:[#allocation5 + $0x18] sm:$0xff]   ;;  %v1083_v4 = vld [vmem:[#allocation2] sm:$0xff]  }
  0x4b   :  { %939 = vmatpush3.bf16.msra.mxu0 %v1075_v0  ;;  %954 = vmatprep.mubr.bf16.mxu0 %v1083_v4  ;;  %v1079_v5 = vld [vmem:[#allocation5 + $0x20] sm:$0xff]   ;;  %v1080_v6 = vld [vmem:[#allocation5 + $0x28] sm:$0xff]   ;;  %v1081_v9 = vld [vmem:[#allocation5 + $0x30] sm:$0xff]  }
  0x4c   :  { %940 = vmatprep.subr.bf16.mxu0 %v1076_v1  ;;  %v1091_v7 = vld [vmem:[#allocation7] sm:$0xff]   ;;  %v1092_v8 = vld [vmem:[#allocation7 + $0x8] sm:$0xff]   ;;  %v1093_v10 = vld [vmem:[#allocation7 + $0x10] sm:$0xff]  }
  0x4d   :  { %970 = vmatprep.subr.bf16.mxu1 %v1091_v7  ;;  %v1082_v11 = vld [vmem:[#allocation5 + $0x38] sm:$0xff]   ;;  %v1095_v13 = vld [vmem:[#allocation7 + $0x20] sm:$0xff]   ;;  %v1348_v14 = vld [vmem:[#allocation2 + $0x8] sm:$0xff]  }
  0x4e   :  { %971 = vmatpush3.bf16.msra.mxu1 %v1091_v7  ;;  %v1094_v12 = vld [vmem:[#allocation7 + $0x18] sm:$0xff]   ;;  %v1350_v15 = vld [vmem:[#allocation2 + $0x10] sm:$0xff]   ;;  %v1096_v16 = vld [vmem:[#allocation7 + $0x28] sm:$0xff]  }
  0x4f   :  { %941 = vmatpush3.bf16.msra.mxu0 %v1076_v1  ;;  %972 = vmatprep.subr.bf16.mxu1 %v1092_v8  ;;  %v1354_v17 = vld [vmem:[#allocation2 + $0x18] sm:$0xff]   ;;  %v1356_v18 = vld [vmem:[#allocation2 + $0x20] sm:$0xff]   ;;  %v1360_v19 = vld [vmem:[#allocation2 + $0x28] sm:$0xff]  }
  0x50   :  { %942 = vmatprep.subr.bf16.mxu0 %v1077_v2  ;;  %v1362_v20 = vld [vmem:[#allocation2 + $0x30] sm:$0xff]   ;;  %v1366_v21 = vld [vmem:[#allocation2 + $0x38] sm:$0xff]   ;;  %v839_v24 = vld [vmem:[%s1399_s2] ss:$0 sm:$0xff] }
  0x51   :  { %v1097_v22 = vld [vmem:[#allocation7 + $0x30] sm:$0xff]   ;;  %v1098_v23 = vld [vmem:[#allocation7 + $0x38] sm:$0xff]  }
  0x52   :  { %973 = vmatpush3.bf16.msra.mxu1 %v1092_v8 }
  0x53   :  { %943 = vmatpush3.bf16.msra.mxu0 %v1077_v2  ;;  %974 = vmatprep.subr.bf16.mxu1 %v1093_v10 }
  0x54   :  { %944 = vmatprep.subr.bf16.mxu0 %v1078_v3 }
  0x56   :  { %975 = vmatpush3.bf16.msra.mxu1 %v1093_v10 }
  0x57   :  { %945 = vmatpush3.bf16.msra.mxu0 %v1078_v3  ;;  %976 = vmatprep.subr.bf16.mxu1 %v1094_v12 }
  0x58   :  { %946 = vmatprep.subr.bf16.mxu0 %v1079_v5 }
  0x5a   :  { %977 = vmatpush3.bf16.msra.mxu1 %v1094_v12 }
  0x5b   :  { %947 = vmatpush3.bf16.msra.mxu0 %v1079_v5  ;;  %978 = vmatprep.subr.bf16.mxu1 %v1095_v13 }
  0x5c   :  { %948 = vmatprep.subr.bf16.mxu0 %v1080_v6 }
  0x5e   :  { %979 = vmatpush3.bf16.msra.mxu1 %v1095_v13 }
  0x5f   :  { %949 = vmatpush3.bf16.msra.mxu0 %v1080_v6  ;;  %980 = vmatprep.subr.bf16.mxu1 %v1096_v16 }
  0x60   :  { %950 = vmatprep.subr.bf16.mxu0 %v1081_v9 }
  0x62   :  { %981 = vmatpush3.bf16.msra.mxu1 %v1096_v16 }
  0x63   :  { %951 = vmatpush3.bf16.msra.mxu0 %v1081_v9  ;;  %982 = vmatprep.subr.bf16.mxu1 %v1097_v22 }
  0x64   :  { %952 = vmatprep.subr.bf16.mxu0 %v1082_v11 }
  0x66   :  { %983 = vmatpush3.bf16.msra.mxu1 %v1097_v22 }
  0x67   :  { %953 = vmatpush3.bf16.msra.mxu0 %v1082_v11  ;;  %984 = vmatprep.subr.bf16.mxu1 %v1098_v23 }
  0x6a   :  { %955 = vmatmul.mubr.bf16.vlgmr.msra.gmra.mrb[0].mxu0 %v1348_v14  ;;  %985 = vmatpush3.bf16.msra.mxu1 %v1098_v23 }
  0x6b   :  { %958 = vmatprep.mubr.bf16.mxu0 %v1350_v15 }
  0x72   :  { %959 = vmatmul.mubr.bf16.gmra.mrb[4].mxu0 %v1354_v17 }
  0x73   :  { %962 = vmatprep.mubr.bf16.mxu0 %v1356_v18 }
  0x7a   :  { %963 = vmatmul.mubr.bf16.gmra.mrb[8].mxu0 %v1360_v19 }
  0x7b   :  { %966 = vmatprep.mubr.bf16.mxu0 %v1362_v20 }
  0x82   :  { %967 = vmatmul.mubr.bf16.gmra.mrb[12].mxu0 %v1366_v21 }
  0x83   :  { %1018 = vmatprep.mubr.bf16.mxu0 %v1083_v4 }
 0x13d   :  { %v956_v25 = vpop.f32.mrb[0].mxu0 }
 0x13e   :  { %v261_v26 = vadd.f32 %v956_v25, %v839_v24  ;;  %v252_v27 = vpop.f32.mrb[1].mxu0  ;;  %v1099_v25 = vld [vmem:[#allocation8] sm:$0xff]  }
 0x13f   :  { %v253_v28 = vadd.f32 %v839_v24, %v252_v27  ;;  %v957_v29 = vpop.f32.mrb[2].mxu0  ;;  %1034 = vmatprep.subr.bf16.mxu1 %v1099_v25  ;;  %v1101_v27 = vld [vmem:[#allocation8 + $0x10] sm:$0xff]  }
 0x140   :  { %v264_v30 = vadd.f32 %v957_v29, %v839_v24  ;;  %v255_v31 = vpop.f32.mrb[3].mxu0  ;;  %v317_v33 = vmax.f32 %v261_v26, 0.0  ;;  %v1100_v26 = vld [vmem:[#allocation8 + $0x8] sm:$0xff]  }
 0x141   :  { %v256_v32 = vadd.f32 %v839_v24, %v255_v31  ;;  %v315_v35 = vmax.f32 %v253_v28, 0.0  ;;  %v1102_v28 = vld [vmem:[#allocation8 + $0x18] sm:$0xff]   ;;  %v1104_v29 = vld [vmem:[#allocation8 + $0x28] sm:$0xff]  }
 0x142   :  { %v318_v34 = vmax.f32 %v264_v30, 0.0 }
 0x143   :  { %v316_v36 = vmax.f32 %v256_v32, 0.0 }
 0x144   :  { %v332_v37 = vpack.c.bf16 %v318_v34, %v317_v33 }
 0x145   :  { %v960_v38 = vpop.f32.mrb[4].mxu0  ;;  %v331_v39 = vpack.c.bf16 %v316_v36, %v315_v35 }
 0x146   :  { %v277_v40 = vadd.f32 %v960_v38, %v839_v24  ;;  %v268_v41 = vpop.f32.mrb[5].mxu0 }
 0x147   :  { %v269_v42 = vadd.f32 %v839_v24, %v268_v41  ;;  %v961_v43 = vpop.f32.mrb[6].mxu0  ;;  %986 = vmatprep.mubr.bf16.mxu1 %v331_v39 }
 0x148   :  { %v280_v44 = vadd.f32 %v961_v43, %v839_v24  ;;  %v271_v45 = vpop.f32.mrb[7].mxu0  ;;  %987 = vmatmul.mubr.bf16.vlgmr.msra.gmra.mrb[0].mxu1 %v332_v37  ;;  %v321_v47 = vmax.f32 %v277_v40, 0.0 }
 0x149   :  { %v272_v46 = vadd.f32 %v839_v24, %v271_v45  ;;  %v319_v49 = vmax.f32 %v269_v42, 0.0  ;;  %1035 = vmatpush3.bf16.msra.mxu1 %v1099_v25 }
 0x14a   :  { %v322_v48 = vmax.f32 %v280_v44, 0.0  ;;  %1036 = vmatprep.subr.bf16.mxu1 %v1100_v26 }
 0x14b   :  { %v320_v50 = vmax.f32 %v272_v46, 0.0 }
 0x14c   :  { %v334_v51 = vpack.c.bf16 %v322_v48, %v321_v47 }
 0x14d   :  { %v333_v52 = vpack.c.bf16 %v320_v50, %v319_v49  ;;  %v964_v53 = vpop.f32.mrb[8].mxu0  ;;  %1037 = vmatpush3.bf16.msra.mxu1 %v1100_v26 }
 0x14e   :  { %v293_v54 = vadd.f32 %v964_v53, %v839_v24  ;;  %v284_v55 = vpop.f32.mrb[9].mxu0  ;;  %1038 = vmatprep.subr.bf16.mxu1 %v1101_v27 }
 0x14f   :  { %v285_v56 = vadd.f32 %v839_v24, %v284_v55  ;;  %v965_v57 = vpop.f32.mrb[10].mxu0  ;;  %990 = vmatprep.mubr.bf16.mxu1 %v333_v52  ;;  %v1106_v55 = vld [vmem:[#allocation8 + $0x38] sm:$0xff]  }
 0x150   :  { %v296_v58 = vadd.f32 %v965_v57, %v839_v24  ;;  %v287_v59 = vpop.f32.mrb[11].mxu0  ;;  %991 = vmatmul.mubr.bf16.gmra.mrb[4].mxu1 %v334_v51  ;;  %v325_v61 = vmax.f32 %v293_v54, 0.0  ;;  %v1105_v54 = vld [vmem:[#allocation8 + $0x30] sm:$0xff]  }
 0x151   :  { %v288_v60 = vadd.f32 %v839_v24, %v287_v59  ;;  %v323_v63 = vmax.f32 %v285_v56, 0.0  ;;  %1039 = vmatpush3.bf16.msra.mxu1 %v1101_v27 }
 0x152   :  { %v326_v62 = vmax.f32 %v296_v58, 0.0  ;;  %1040 = vmatprep.subr.bf16.mxu1 %v1102_v28 }
 0x153   :  { %v324_v0 = vmax.f32 %v288_v60, 0.0 }
 0x154   :  { %v336_v1 = vpack.c.bf16 %v326_v62, %v325_v61 }
 0x155   :  { %v335_v2 = vpack.c.bf16 %v324_v0, %v323_v63  ;;  %v968_v3 = vpop.f32.mrb[12].mxu0  ;;  %1041 = vmatpush3.bf16.msra.mxu1 %v1102_v28 }
 0x156   :  { %v309_v4 = vadd.f32 %v968_v3, %v839_v24  ;;  %v300_v5 = vpop.f32.mrb[13].mxu0 }
 0x157   :  { %v301_v6 = vadd.f32 %v839_v24, %v300_v5  ;;  %v969_v7 = vpop.f32.mrb[14].mxu0  ;;  %994 = vmatprep.mubr.bf16.mxu1 %v335_v2 }
 0x158   :  { %v312_v8 = vadd.f32 %v969_v7, %v839_v24  ;;  %v303_v9 = vpop.f32.mrb[15].mxu0  ;;  %995 = vmatmul.mubr.bf16.gmra.mrb[8].mxu1 %v336_v1  ;;  %v329_v11 = vmax.f32 %v309_v4, 0.0 }
 0x159   :  { %v304_v10 = vadd.f32 %v839_v24, %v303_v9  ;;  %v327_v13 = vmax.f32 %v301_v6, 0.0  ;;  %v1103_v24 = vld [vmem:[#allocation8 + $0x20] sm:$0xff]  }
 0x15a   :  { %v330_v12 = vmax.f32 %v312_v8, 0.0  ;;  %1042 = vmatprep.subr.bf16.mxu1 %v1103_v24 }
 0x15b   :  { %v328_v16 = vmax.f32 %v304_v10, 0.0  ;;  %1043 = vmatpush3.bf16.msra.mxu1 %v1103_v24 }
 0x15c   :  { %v338_v22 = vpack.c.bf16 %v330_v12, %v329_v11  ;;  %1044 = vmatprep.subr.bf16.mxu1 %v1104_v29 }
 0x15d   :  { %v337_v23 = vpack.c.bf16 %v328_v16, %v327_v13 }
 0x15f   :  { %998 = vmatprep.mubr.bf16.mxu1 %v337_v23  ;;  %1045 = vmatpush3.bf16.msra.mxu1 %v1104_v29 }
 0x160   :  { %999 = vmatmul.mubr.bf16.gmra.mrb[12].mxu1 %v338_v22  ;;  %1046 = vmatprep.subr.bf16.mxu1 %v1105_v54 }
 0x163   :  { %1047 = vmatpush3.bf16.msra.mxu1 %v1105_v54 }
 0x164   :  { %1048 = vmatprep.subr.bf16.mxu1 %v1106_v55 }
 0x167   :  { %1049 = vmatpush3.bf16.msra.mxu1 %v1106_v55 }
 0x21b   :  { %v988_v30 = vpop.f32.mrb[0].mxu1 }
 0x21c   :  { %v437_v31 = vpop.f32.mrb[1].mxu1 }
 0x21d   :  { %v989_v32 = vpop.f32.mrb[2].mxu1 }
 0x21e   :  { %v501_v33 = vpack.c.bf16 %v989_v32, %v988_v30  ;;  %v440_v34 = vpop.f32.mrb[3].mxu1 }
 0x21f   :  { %v500_v35 = vpack.c.bf16 %v440_v34, %v437_v31 }
 0x221   :  { %1002 = vmatprep.subr.bf16.mxu0 %v500_v35 }
 0x222   :  { %1003 = vmatpush3.bf16.msra.mxu0 %v500_v35 }
 0x223   :  { %v992_v36 = vpop.f32.mrb[4].mxu1  ;;  %1004 = vmatprep.subr.bf16.mxu0 %v501_v33 }
 0x224   :  { %v453_v37 = vpop.f32.mrb[5].mxu1 }
 0x225   :  { %v993_v38 = vpop.f32.mrb[6].mxu1 }
 0x226   :  { %v503_v39 = vpack.c.bf16 %v993_v38, %v992_v36  ;;  %v456_v40 = vpop.f32.mrb[7].mxu1  ;;  %1005 = vmatpush3.bf16.msra.mxu0 %v501_v33 }
 0x227   :  { %v502_v41 = vpack.c.bf16 %v456_v40, %v453_v37 }
 0x229   :  { %1006 = vmatprep.subr.bf16.mxu0 %v502_v41 }
 0x22a   :  { %1007 = vmatpush3.bf16.msra.mxu0 %v502_v41 }
 0x22b   :  { %v996_v42 = vpop.f32.mrb[8].mxu1  ;;  %1008 = vmatprep.subr.bf16.mxu0 %v503_v39 }
 0x22c   :  { %v469_v43 = vpop.f32.mrb[9].mxu1 }
 0x22d   :  { %v997_v44 = vpop.f32.mrb[10].mxu1 }
 0x22e   :  { %v505_v45 = vpack.c.bf16 %v997_v44, %v996_v42  ;;  %v472_v46 = vpop.f32.mrb[11].mxu1  ;;  %1009 = vmatpush3.bf16.msra.mxu0 %v503_v39 }
 0x22f   :  { %v504_v47 = vpack.c.bf16 %v472_v46, %v469_v43 }
 0x231   :  { %1010 = vmatprep.subr.bf16.mxu0 %v504_v47 }
 0x232   :  { %1011 = vmatpush3.bf16.msra.mxu0 %v504_v47 }
 0x233   :  { %v1000_v48 = vpop.f32.mrb[12].mxu1  ;;  %1012 = vmatprep.subr.bf16.mxu0 %v505_v45 }
 0x234   :  { %v485_v49 = vpop.f32.mrb[13].mxu1 }
 0x235   :  { %v1001_v50 = vpop.f32.mrb[14].mxu1 }
 0x236   :  { %v507_v51 = vpack.c.bf16 %v1001_v50, %v1000_v48  ;;  %v488_v52 = vpop.f32.mrb[15].mxu1  ;;  %1013 = vmatpush3.bf16.msra.mxu0 %v505_v45 }
 0x237   :  { %v506_v53 = vpack.c.bf16 %v488_v52, %v485_v49  ;;  %v865_v49 = vld [vmem:[%s1403_s6] ss:$0 sm:$0xff]  ;;  %s1231_s6 = smov [#allocation10]  }
 0x238   :  { %s825_s28 = sshll.u32 %s1231_s6, 4  ;;  %s826_s28 = int_to_ptr.vmem [resolvable:$true] %s825_s28 }
 0x239   :  { %1014 = vmatprep.subr.bf16.mxu0 %v506_v53  ;;  %s1195_s29 = scalar_lea.vmem %s826_s28, 2048  ;;  %p1200_p5 = scmp.lt.s32.totalorder %s826_s28, %s826_s28 }
 0x23a   :  { %1015 = vmatpush3.bf16.msra.mxu0 %v506_v53  ;;  %p1196_p4 = scmp.ne.s32.totalorder %s826_s28, %s1195_s29  ;;  %p1201_p6 = scmp.lt.s32.totalorder %s1195_s29, %s1195_s29 }
 0x23b   :  { %1016 = vmatprep.subr.bf16.mxu0 %v507_v51 }
 0x23c   :  { %p1202_p7 = por %p1201_p6, %p1200_p5 }
 0x23e   :  { %1017 = vmatpush3.bf16.msra.mxu0 %v507_v51  ;;  %p1203_p8 = pnand %p1202_p7, %p1196_p4 }
 0x241   :  { %1019 = vmatmul.mubr.bf16.vlgmr.msra.gmra.mrb[16].mxu0 %v1348_v14  ;;  %v864_v14 = vld [vmem:[%s1401_s4] ss:$0 sm:$0xff] }
 0x242   :  { %1022 = vmatprep.mubr.bf16.mxu0 %v1350_v15 }
 0x249   :  { %1023 = vmatmul.mubr.bf16.gmra.mrb[20].mxu0 %v1354_v17 }
 0x24a   :  { %1026 = vmatprep.mubr.bf16.mxu0 %v1356_v18 }
 0x251   :  { %1027 = vmatmul.mubr.bf16.gmra.mrb[24].mxu0 %v1360_v19 }
 0x252   :  { %1030 = vmatprep.mubr.bf16.mxu0 %v1362_v20 }
 0x259   :  { %1031 = vmatmul.mubr.bf16.gmra.mrb[28].mxu0 %v1366_v21 }
 0x314   :  { %v1020_v15 = vpop.f32.mrb[16].mxu0 }
 0x315   :  { %v558_v17 = vadd.f32 %v1020_v15, %v864_v14  ;;  %v549_v56 = vpop.f32.mrb[17].mxu0 }
 0x316   :  { %v550_v18 = vadd.f32 %v864_v14, %v549_v56  ;;  %v1021_v57 = vpop.f32.mrb[18].mxu0 }
 0x317   :  { %v561_v19 = vadd.f32 %v1021_v57, %v864_v14  ;;  %v552_v58 = vpop.f32.mrb[19].mxu0  ;;  %v614_v59 = vmax.f32 %v558_v17, 0.0 }
 0x318   :  { %v553_v20 = vadd.f32 %v864_v14, %v552_v58  ;;  %v612_v60 = vmax.f32 %v550_v18, 0.0 }
 0x319   :  { %v615_v21 = vmax.f32 %v561_v19, 0.0 }
 0x31a   :  { %v613_v61 = vmax.f32 %v553_v20, 0.0 }
 0x31b   :  { %v629_v62 = vpack.c.bf16 %v615_v21, %v614_v59 }
 0x31c   :  { %v628_v63 = vpack.c.bf16 %v613_v61, %v612_v60  ;;  %v1024_v0 = vpop.f32.mrb[20].mxu0 }
 0x31d   :  { %v574_v1 = vadd.f32 %v1024_v0, %v864_v14  ;;  %v565_v2 = vpop.f32.mrb[21].mxu0 }
 0x31e   :  { %v566_v3 = vadd.f32 %v864_v14, %v565_v2  ;;  %v1025_v4 = vpop.f32.mrb[22].mxu0  ;;  %1050 = vmatprep.mubr.bf16.mxu1 %v628_v63 }
 0x31f   :  { %v577_v5 = vadd.f32 %v1025_v4, %v864_v14  ;;  %v568_v6 = vpop.f32.mrb[23].mxu0  ;;  %1051 = vmatmul.mubr.bf16.vlgmr.msra.gmra.mrb[16].mxu1 %v629_v62  ;;  %v618_v8 = vmax.f32 %v574_v1, 0.0 }
 0x320   :  { %v569_v7 = vadd.f32 %v864_v14, %v568_v6  ;;  %v616_v10 = vmax.f32 %v566_v3, 0.0 }
 0x321   :  { %v619_v9 = vmax.f32 %v577_v5, 0.0 }
 0x322   :  { %v617_v11 = vmax.f32 %v569_v7, 0.0 }
 0x323   :  { %v631_v12 = vpack.c.bf16 %v619_v9, %v618_v8 }
 0x324   :  { %v630_v13 = vpack.c.bf16 %v617_v11, %v616_v10  ;;  %v1028_v16 = vpop.f32.mrb[24].mxu0 }
 0x325   :  { %v590_v22 = vadd.f32 %v1028_v16, %v864_v14  ;;  %v581_v23 = vpop.f32.mrb[25].mxu0 }
 0x326   :  { %v582_v25 = vadd.f32 %v864_v14, %v581_v23  ;;  %v1029_v26 = vpop.f32.mrb[26].mxu0  ;;  %1054 = vmatprep.mubr.bf16.mxu1 %v630_v13 }
 0x327   :  { %v593_v27 = vadd.f32 %v1029_v26, %v864_v14  ;;  %v584_v28 = vpop.f32.mrb[27].mxu0  ;;  %1055 = vmatmul.mubr.bf16.gmra.mrb[20].mxu1 %v631_v12  ;;  %v622_v29 = vmax.f32 %v590_v22, 0.0 }
 0x328   :  { %v585_v24 = vadd.f32 %v864_v14, %v584_v28  ;;  %v620_v31 = vmax.f32 %v582_v25, 0.0 }
 0x329   :  { %v623_v30 = vmax.f32 %v593_v27, 0.0 }
 0x32a   :  { %v621_v32 = vmax.f32 %v585_v24, 0.0 }
 0x32b   :  { %v633_v33 = vpack.c.bf16 %v623_v30, %v622_v29 }
 0x32c   :  { %v632_v34 = vpack.c.bf16 %v621_v32, %v620_v31  ;;  %v1032_v35 = vpop.f32.mrb[28].mxu0 }
 0x32d   :  { %v606_v36 = vadd.f32 %v1032_v35, %v864_v14  ;;  %v597_v37 = vpop.f32.mrb[29].mxu0 }
 0x32e   :  { %v598_v38 = vadd.f32 %v864_v14, %v597_v37  ;;  %v1033_v39 = vpop.f32.mrb[30].mxu0  ;;  %1058 = vmatprep.mubr.bf16.mxu1 %v632_v34 }
 0x32f   :  { %v609_v40 = vadd.f32 %v1033_v39, %v864_v14  ;;  %v600_v41 = vpop.f32.mrb[31].mxu0  ;;  %1059 = vmatmul.mubr.bf16.gmra.mrb[24].mxu1 %v633_v33  ;;  %v626_v43 = vmax.f32 %v606_v36, 0.0 }
 0x330   :  { %v601_v42 = vadd.f32 %v864_v14, %v600_v41  ;;  %v624_v45 = vmax.f32 %v598_v38, 0.0 }
 0x331   :  { %v627_v44 = vmax.f32 %v609_v40, 0.0 }
 0x332   :  { %v625_v46 = vmax.f32 %v601_v42, 0.0 }
 0x333   :  { %v635_v47 = vpack.c.bf16 %v627_v44, %v626_v43 }
 0x334   :  { %v634_v48 = vpack.c.bf16 %v625_v46, %v624_v45 }
 0x336   :  { %1062 = vmatprep.mubr.bf16.mxu1 %v634_v48 }
 0x337   :  { %1063 = vmatmul.mubr.bf16.gmra.mrb[28].mxu1 %v635_v47 }
 0x3f2   :  { %v1052_v50 = vpop.f32.mrb[16].mxu1 }
 0x3f3   :  { %v750_v51 = vadd.f32 %v1052_v50, %v865_v49  ;;  %v741_v52 = vpop.f32.mrb[17].mxu1 }
 0x3f4   :  { %v742_v53 = vadd.f32 %v865_v49, %v741_v52  ;;  %v1053_v54 = vpop.f32.mrb[18].mxu1 }
 0x3f5   :  { %806 = vst [vmem:[#allocation10 + $0x10] sm:$0xff] %v750_v51  ;;  %v753_v55 = vadd.f32 %v1053_v54, %v865_v49  ;;  %v744_v14 = vpop.f32.mrb[19].mxu1 }
 0x3f6   :  { %804 = vst [vmem:[#allocation10] sm:$0xff] %v742_v53  ;;  %v745_v15 = vadd.f32 %v865_v49, %v744_v14 }
 0x3f7   :  { %807 = vst [vmem:[#allocation10 + $0x18] sm:$0xff] %v753_v55 }
 0x3f8   :  { %805 = vst [vmem:[#allocation10 + $0x8] sm:$0xff] %v745_v15 }
 0x3fa   :  { %v1056_v17 = vpop.f32.mrb[20].mxu1 }
 0x3fb   :  { %v766_v56 = vadd.f32 %v1056_v17, %v865_v49  ;;  %v757_v18 = vpop.f32.mrb[21].mxu1 }
 0x3fc   :  { %v758_v57 = vadd.f32 %v865_v49, %v757_v18  ;;  %v1057_v19 = vpop.f32.mrb[22].mxu1 }
 0x3fd   :  { %810 = vst [vmem:[#allocation10 + $0x30] sm:$0xff] %v766_v56  ;;  %v769_v58 = vadd.f32 %v1057_v19, %v865_v49  ;;  %v760_v20 = vpop.f32.mrb[23].mxu1 }
 0x3fe   :  { %808 = vst [vmem:[#allocation10 + $0x20] sm:$0xff] %v758_v57  ;;  %v761_v59 = vadd.f32 %v865_v49, %v760_v20 }
 0x3ff   :  { %811 = vst [vmem:[#allocation10 + $0x38] sm:$0xff] %v769_v58 }
 0x400   :  { %809 = vst [vmem:[#allocation10 + $0x28] sm:$0xff] %v761_v59 }
 0x402   :  { %v1060_v21 = vpop.f32.mrb[24].mxu1 }
 0x403   :  { %v782_v60 = vadd.f32 %v1060_v21, %v865_v49  ;;  %v773_v61 = vpop.f32.mrb[25].mxu1 }
 0x404   :  { %v774_v62 = vadd.f32 %v865_v49, %v773_v61  ;;  %v1061_v63 = vpop.f32.mrb[26].mxu1 }
 0x405   :  { %814 = vst [vmem:[#allocation10 + $0x50] sm:$0xff] %v782_v60  ;;  %v785_v0 = vadd.f32 %v1061_v63, %v865_v49  ;;  %v776_v1 = vpop.f32.mrb[27].mxu1 }
 0x406   :  { %812 = vst [vmem:[#allocation10 + $0x40] sm:$0xff] %v774_v62  ;;  %v777_v2 = vadd.f32 %v865_v49, %v776_v1 }
 0x407   :  { %815 = vst [vmem:[#allocation10 + $0x58] sm:$0xff] %v785_v0 }
 0x408   :  { %813 = vst [vmem:[#allocation10 + $0x48] sm:$0xff] %v777_v2 }
 0x40a   :  { %v1064_v3 = vpop.f32.mrb[28].mxu1 }
 0x40b   :  { %v798_v4 = vadd.f32 %v1064_v3, %v865_v49  ;;  %v789_v5 = vpop.f32.mrb[29].mxu1 }
 0x40c   :  { %v790_v6 = vadd.f32 %v865_v49, %v789_v5  ;;  %v1065_v7 = vpop.f32.mrb[30].mxu1 }
 0x40d   :  { %818 = vst [vmem:[#allocation10 + $0x70] sm:$0xff] %v798_v4  ;;  %v801_v8 = vadd.f32 %v1065_v7, %v865_v49  ;;  %v792_v9 = vpop.f32.mrb[31].mxu1 }
 0x40e   :  { %816 = vst [vmem:[#allocation10 + $0x60] sm:$0xff] %v790_v6  ;;  %v793_v10 = vadd.f32 %v865_v49, %v792_v9 }
 0x40f   :  { %819 = vst [vmem:[#allocation10 + $0x78] sm:$0xff] %v801_v8 }
 0x410   :  { %817 = vst [vmem:[#allocation10 + $0x68] sm:$0xff] %v793_v10 }
 0x411   :  { %1206 = shalt.err (!%p1203_p8)
}
 0x412   :  { %s1207_s9 = scalar_lea.hbm %s1404_s7, 2048 }
 0x413   :  { %p1208_p9 = scmp.ne.s32.totalorder %s1404_s7, %s1207_s9  ;;  %p1211_p10 = scmp.lt.u32.totalorder %s1207_s9, %s1404_s7 }
 0x415   :  { %p1213_p11 = pnand %p1211_p10, %p1208_p9 }
 0x417   :  { %1216 = shalt.err (!%p1213_p11)
}
 0x418   :  { %s1232_s16 = smov 128   ;;  %s1233_s0 = smov 8  }
 0x419   :  { %831 = dma.vmem_to_hbm [thread:$0]  %s826_s28, 2048, %s1404_s7, [#allocation4], %s1232_s16, %s1232_s16, %s1233_s0  }
 0x41a   :  { %1223 = dma.done.wait [#allocation4], 2048  }
 0x41b   :  { %1224 = vsyncadd [#allocation4], 4294965248 }
 0x41c   :  { %835 = vsyncpa [#allocation3], 1 }
 0x41d   :  { %836 = vsyncpa [#allocation6], 1 }
 0x41e   :  { %837 = vsyncpa [#allocation9], 1 }
 0x41f   :  { %838 = vsyncpa [#allocation4], 1 }

</bundles_post_ra>
